<compile_context>
chip_gen: v7x
topology: tpu7x:2x2x1
jax: 0.10.0
libtpu: 0.0.40
codegen_flags: <defaults>
</compile_context>

<pallas_src>
import math

import jax
import jax.numpy as jnp
from jax.experimental import pallas as pl
from jax.experimental.pallas import tpu as pltpu

BETA = 0.9
GAMMA = -0.1
EPSILON = 2.0

_TM_MAX = 256      # A tile for the (rare) A-tiled fallback
_TK_MAX = 1024     # contraction (B) tile cap
_TN_MAX = 2048     # output-lane (N*C) tile cap


def _round_up(v, m):
    return ((v + m - 1) // m) * m


def _pick_tile(dim, cap, align=128):
    """Return (tile, padded_dim) with tile | padded_dim.

    Prefers the full dim (no padding) when dim <= cap, then an `align`-multiple
    divisor of the unpadded dim, and only pads as a last resort.
    """
    if dim <= cap:
        return dim, dim
    cap_al = max(align, (cap // align) * align)
    for t in range(cap_al, 0, -align):
        if dim % t == 0:
            return t, dim
    padded = _round_up(dim, align)
    for t in range(min(cap_al, padded), 0, -align):
        if padded % t == 0:
            return t, padded
    return align, padded  # unreachable


def _resident_bytes(ap, tk, tn):
    # double-buffered x block + double-buffered u & w blocks + (double-buffered) out block
    return 4 * (2 * ap * tk + 2 * 2 * tk * tn + 2 * ap * tn)


def _gated_weights(a, u, w):
    """z(u; alpha) * w.  `a` is the scalar alpha**(1/beta) (= exp(log(alpha)/beta)).

    sigmoid(log(u) - log(1-u) + log(a)) == u*a / (u*a + (1-u)); the reciprocal is
    taken on the EUP (approx) and refined with one Newton step (~1 ulp).
    """
    ua = u * a
    d = ua + (1.0 - u)
    r = pl.reciprocal(d, approx=True)
    r = r * (2.0 - d * r)              # Newton-Raphson refinement
    s = ua * r
    # s_ = s*(eps-gamma)+gamma ; PyTorch's two-step clamp == clip(s_, 0, 1)
    z = jnp.clip(s * (EPSILON - GAMMA) + GAMMA, 0.0, 1.0)
    return z * w


# ---------------------------------------------------------------------------
# Kernels
# ---------------------------------------------------------------------------
def _resident_direct_kernel(a_ref, x_ref, u_ref, w_ref, o_ref):
    """A resident, B fits a single tile: no reduction axis, direct store."""
    gated = _gated_weights(a_ref[0], u_ref[...], w_ref[...])
    o_ref[...] = jnp.dot(x_ref[...], gated, preferred_element_type=jnp.float32)


def _resident_acc_kernel(a_ref, x_ref, u_ref, w_ref, o_ref):
    """A resident, reduction over B tiles; accumulate directly into o_ref."""
    k = pl.program_id(1)

    @pl.when(k == 0)
    def _():
        o_ref[...] = jnp.zeros_like(o_ref)

    gated = _gated_weights(a_ref[0], u_ref[...], w_ref[...])
    o_ref[...] += jnp.dot(x_ref[...], gated, preferred_element_type=jnp.float32)


def _tiled_a_kernel(a_ref, x_ref, u_ref, w_ref, o_ref):
    """Fallback: A tiled as well (gate recomputed per A tile), still one pass."""
    k = pl.program_id(2)

    @pl.when(k == 0)
    def _():
        o_ref[...] = jnp.zeros_like(o_ref)

    gated = _gated_weights(a_ref[0], u_ref[...], w_ref[...])
    o_ref[...] += jnp.dot(x_ref[...], gated, preferred_element_type=jnp.float32)


# ---------------------------------------------------------------------------
# Wrapper
# ---------------------------------------------------------------------------
def transform_layer_forward(x, alpha, u, w_params, *,
                            tk_cap=_TK_MAX, tn_cap=_TN_MAX, a_resident=None):
    """x: [A,B] f32; alpha: [1] f32 (>0); u, w_params: [B,N,C] f32 -> [A,N,C] f32."""
    A, B = x.shape
    Bu, N, C = u.shape
    assert B == Bu
    NC = N * C

    x = x.astype(jnp.float32)
    u2 = u.reshape(B, NC).astype(jnp.float32)
    w2 = w_params.reshape(B, NC).astype(jnp.float32)

    # Scalar for the algebraic gate: exp(log(alpha)/beta) == alpha**(1/beta).
    a_scalar = (alpha.astype(jnp.float32) ** (1.0 / BETA)).reshape(1)

    # --- generation-aware VMEM budget (~96 MiB v5e/v6e, ~48 MiB v7x) -------
    try:
        vmem_cap = int(pltpu.get_tpu_info().vmem_capacity_bytes)
    except Exception:
        vmem_cap = 64 * 1024 * 1024  # conservative default
    budget = (vmem_cap * 3) // 4

    Ap = _round_up(A, 8)

    # --- aligned tiles that divide B / NC (avoid host padding of big tensors) ---
    tk, Bp = _pick_tile(B, tk_cap)
    tn, NCp = _pick_tile(NC, tn_cap)
    # shrink tile caps until the A-resident working set fits the VMEM budget
    while _resident_bytes(Ap, tk, tn) > budget and (tk_cap > 128 or tn_cap > 128):
        if tn_cap >= tk_cap and tn_cap > 128:
            tn_cap //= 2
        else:
            tk_cap //= 2
        tk, Bp = _pick_tile(B, tk_cap)
        tn, NCp = _pick_tile(NC, tn_cap)

    use_resident = (_resident_bytes(Ap, tk, tn) <= budget) if a_resident is None \
        else bool(a_resident)

    # --- padding (zero padding is safe: u=0 -> z=clip(-0.1,0,1)=0 -> gated=0) ---
    if Bp != B:                                   # rare: B has no aligned divisor
        x = jnp.pad(x, ((0, 0), (0, Bp - B)))
        u2 = jnp.pad(u2, ((0, Bp - B), (0, 0)))
        w2 = jnp.pad(w2, ((0, Bp - B), (0, 0)))
    if NCp != NC:                                 # rare: NC has no aligned divisor
        u2 = jnp.pad(u2, ((0, 0), (0, NCp - NC)))
        w2 = jnp.pad(w2, ((0, 0), (0, NCp - NC)))

    n_j, n_k = NCp // tn, Bp // tk
    smem_spec = pl.BlockSpec(memory_space=pltpu.MemorySpace.SMEM)

    if use_resident:
        # Keep all of (padded) A resident; u/w streamed and read exactly once.
        if Ap != A:
            x = jnp.pad(x, ((0, Ap - A), (0, 0)))

        # Give the "parallel" j axis >= 2 blocks so both v7x TensorCores work
        # (neutral on single-TC v5e/v6e).
        if n_j == 1 and tn % 256 == 0:
            tn //= 2
            n_j = NCp // tn

        cost = pl.CostEstimate(
            flops=2 * Ap * Bp * NCp + 7 * Bp * NCp,
            transcendentals=Bp * NCp,
            bytes_accessed=4 * (n_j * Ap * Bp + 2 * Bp * NCp + Ap * NCp))
        params = pltpu.CompilerParams(
            dimension_semantics=("parallel", "arbitrary") if n_k > 1 else ("parallel",),
            vmem_limit_bytes=budget)

        if n_k > 1:
            out2 = pl.pallas_call(
                _resident_acc_kernel,
                out_shape=jax.ShapeDtypeStruct((Ap, NCp), jnp.float32),
                grid_spec=pltpu.PrefetchScalarGridSpec(
                    num_scalar_prefetch=0,
                    grid=(n_j, n_k),
                    in_specs=[
                        smem_spec,                                        # alpha**(1/beta)
                        pl.BlockSpec((Ap, tk), lambda j, k: (0, k)),      # x (A resident)
                        pl.BlockSpec((tk, tn), lambda j, k: (k, j)),      # u
                        pl.BlockSpec((tk, tn), lambda j, k: (k, j)),      # w
                    ],
                    out_specs=pl.BlockSpec((Ap, tn), lambda j, k: (0, j)),
                ),
                compiler_params=params,
                cost_estimate=cost,
            )(a_scalar, x, u2, w2)
        else:
            out2 = pl.pallas_call(
                _resident_direct_kernel,
                out_shape=jax.ShapeDtypeStruct((Ap, NCp), jnp.float32),
                grid_spec=pltpu.PrefetchScalarGridSpec(
                    num_scalar_prefetch=0,
                    grid=(n_j,),
                    in_specs=[
                        smem_spec,
                        pl.BlockSpec((Ap, tk), lambda j: (0, 0)),         # x (A resident)
                        pl.BlockSpec((tk, tn), lambda j: (0, j)),         # u
                        pl.BlockSpec((tk, tn), lambda j: (0, j)),         # w
                    ],
                    out_specs=pl.BlockSpec((Ap, tn), lambda j: (0, j)),
                ),
                compiler_params=params,
                cost_estimate=cost,
            )(a_scalar, x, u2, w2)
    else:
        # Fallback: tile A as well (huge-A / VMEM-constrained regime).  Still a
        # single fused pass; the gate is recomputed per A tile, which is cheap
        # relative to the matmul once A is this large.
        tm = Ap if Ap <= _TM_MAX else _TM_MAX
        Am = _round_up(A, tm)
        if Am != A:
            x = jnp.pad(x, ((0, Am - A), (0, 0)))
        n_i = Am // tm

        cost = pl.CostEstimate(
            flops=2 * Am * Bp * NCp + 7 * n_i * Bp * NCp,
            transcendentals=n_i * Bp * NCp,
            bytes_accessed=4 * (n_j * Am * Bp + 2 * n_i * Bp * NCp + Am * NCp))
        params = pltpu.CompilerParams(
            dimension_semantics=("parallel", "parallel", "arbitrary"),
            vmem_limit_bytes=budget)

        out2 = pl.pallas_call(
            _tiled_a_kernel,
            out_shape=jax.ShapeDtypeStruct((Am, NCp), jnp.float32),
            grid_spec=pltpu.PrefetchScalarGridSpec(
                num_scalar_prefetch=0,
                grid=(n_i, n_j, n_k),
                in_specs=[
                    smem_spec,
                    pl.BlockSpec((tm, tk), lambda i, j, k: (i, k)),       # x
                    pl.BlockSpec((tk, tn), lambda i, j, k: (k, j)),       # u
                    pl.BlockSpec((tk, tn), lambda i, j, k: (k, j)),       # w
                ],
                out_specs=pl.BlockSpec((tm, tn), lambda i, j, k: (i, j)),
            ),
            compiler_params=params,
            cost_estimate=cost,
        )(a_scalar, x, u2, w2)

    return out2[:A, :NC].reshape(A, N, C)


# ---------------------------------------------------------------------------
# Reference & test harness
# ---------------------------------------------------------------------------
def _reference(x, alpha, u, w_params):
    # Exact PyTorch-formula reference (logs + sigmoid + the original two-step clamp).
    s = jax.nn.sigmoid(jnp.log(u) - jnp.log(1.0 - u) + jnp.log(alpha) / BETA)
    s_ = s * (EPSILON - GAMMA) + GAMMA
    z = (s_ > 0.0).astype(jnp.float32) * s_
    z = (z > 1.0).astype(jnp.float32) + (z <= 1.0).astype(jnp.float32) * z
    return jnp.einsum('ab,bnc->anc', x, z * w_params)


def _make_inputs(key, A, input_size, num_experts, output_size):
    k_alpha, k_u, k_w, k_x = jax.random.split(key, 4)
    # alpha ~ U(0,1) like torch.rand((1,)); keep strictly positive for log(alpha)
    alpha = jax.random.uniform(k_alpha, (1,), dtype=jnp.float32,
                               minval=1e-3, maxval=1.0)
    # u ~ U(0,1), strictly inside (0,1) so the reference's log(u)/log(1-u) are finite
    u = jax.random.uniform(k_u, (input_size, num_experts, output_size),
                           dtype=jnp.float32, minval=1e-3, maxval=1.0 - 1e-3)
    # w_params ~ xavier_normal_: fan_in = N*C, fan_out = input_size*C
    fan_in = num_experts * output_size
    fan_out = input_size * output_size
    std = math.sqrt(2.0 / (fan_in + fan_out))
    w_params = std * jax.random.normal(
        k_w, (input_size, num_experts, output_size), dtype=jnp.float32)
    x = jax.random.normal(k_x, (A, input_size), dtype=jnp.float32)
    return x, alpha, u, w_params


if __name__ == "__main__":
    key = jax.random.PRNGKey(0)
    k1, k2, k3 = jax.random.split(key, 3)

    # Case 1: module-sized shapes -> A-resident fused kernel, no reduction axis.
    A, input_size, num_experts, output_size = 8, 32, 4, 32
    x, alpha, u, w_params = _make_inputs(k1, A, input_size, num_experts, output_size)
    out = jax.block_until_ready(transform_layer_forward(x, alpha, u, w_params))
    ref = _reference(x, alpha, u, w_params)
    assert out.shape == (A, num_experts, output_size)
    assert jnp.allclose(out, ref, atol=2e-4, rtol=2e-4), \
        float(jnp.max(jnp.abs(out - ref)))

    # Case 2: larger A still stays resident (one fused pass; u/w read exactly once).
    A2 = 272
    x2, alpha2, u2, w2p = _make_inputs(k2, A2, input_size, num_experts, output_size)
    out2 = jax.block_until_ready(transform_layer_forward(x2, alpha2, u2, w2p))
    ref2 = _reference(x2, alpha2, u2, w2p)
    assert out2.shape == (A2, num_experts, output_size)
    assert jnp.allclose(out2, ref2, atol=2e-4, rtol=2e-4), \
        float(jnp.max(jnp.abs(out2 - ref2)))

    # Case 3: B larger than one tile -> resident kernel with a reduction grid axis.
    A3, in3 = 16, 256
    x3, alpha3, u3, w3p = _make_inputs(k3, A3, in3, num_experts, output_size)
    out3 = jax.block_until_ready(
        transform_layer_forward(x3, alpha3, u3, w3p, tk_cap=128))
    ref3 = _reference(x3, alpha3, u3, w3p)
    assert out3.shape == (A3, num_experts, output_size)
    assert jnp.allclose(out3, ref3, atol=2e-4, rtol=2e-4), \
        float(jnp.max(jnp.abs(out3 - ref3)))

    # Case 4: forced A-tiled fallback path (huge-A / VMEM-constrained regime).
    out4 = jax.block_until_ready(
        transform_layer_forward(x2, alpha2, u2, w2p, a_resident=False))
    assert jnp.allclose(out4, ref2, atol=2e-4, rtol=2e-4), \
        float(jnp.max(jnp.abs(out4 - ref2)))

    print("KERNEL_OK")
</pallas_src>

<mosaic_0001>
module attributes {stable_mosaic.version = 11 : i64} {
  func.func @_resident_direct_kernel(%arg0: i32, %arg1: memref<1xf32, #tpu.memory_space<smem>>, %arg2: memref<8x32xf32, #tpu.memory_space<vmem>>, %arg3: memref<32x128xf32, #tpu.memory_space<vmem>>, %arg4: memref<32x128xf32, #tpu.memory_space<vmem>>, %arg5: memref<8x128xf32, #tpu.memory_space<vmem>>) attributes {dimension_semantics = [#tpu.dimension_semantics<parallel>], iteration_bounds = array<i64: 1>, scalar_prefetch = 0 : i64, scratch_operands = 0 : i64, tpu.core_type = #tpu.core_type<tc>, window_params = [{transform_indices = @transform_0, window_bounds = array<i64: 1>}, {pipeline_mode = #tpu.pipeline_mode<synchronous>, transform_indices = @transform_1, window_bounds = array<i64: 8, 32>}, {transform_indices = @transform_2, window_bounds = array<i64: 32, 128>}, {transform_indices = @transform_3, window_bounds = array<i64: 32, 128>}, {transform_indices = @transform_4, window_bounds = array<i64: 8, 128>}]} {
    %c0 = arith.constant 0 : index
    %0 = memref.load %arg1[%c0] : memref<1xf32, #tpu.memory_space<smem>>
    %c0_0 = arith.constant 0 : index
    %c0_1 = arith.constant 0 : index
    %1 = vector.load %arg3[%c0_0, %c0_1] : memref<32x128xf32, #tpu.memory_space<vmem>>, vector<32x128xf32>
    %c0_2 = arith.constant 0 : index
    %c0_3 = arith.constant 0 : index
    %2 = vector.load %arg4[%c0_2, %c0_3] : memref<32x128xf32, #tpu.memory_space<vmem>>, vector<32x128xf32>
    %3 = vector.broadcast %0 : f32 to vector<32x128xf32>
    %4 = arith.mulf %1, %3 : vector<32x128xf32>
    %cst = arith.constant 1.000000e+00 : f32
    %5 = vector.broadcast %cst : f32 to vector<32x128xf32>
    %6 = arith.subf %5, %1 : vector<32x128xf32>
    %7 = arith.addf %4, %6 : vector<32x128xf32>
    %8 = tpu.reciprocal %7 {approx = true} : vector<32x128xf32> -> vector<32x128xf32>
    %9 = arith.mulf %7, %8 : vector<32x128xf32>
    %cst_4 = arith.constant 2.000000e+00 : f32
    %10 = vector.broadcast %cst_4 : f32 to vector<32x128xf32>
    %11 = arith.subf %10, %9 : vector<32x128xf32>
    %12 = arith.mulf %8, %11 : vector<32x128xf32>
    %13 = arith.mulf %4, %12 : vector<32x128xf32>
    %cst_5 = arith.constant 2.100000e+00 : f32
    %14 = vector.broadcast %cst_5 : f32 to vector<32x128xf32>
    %15 = arith.mulf %13, %14 : vector<32x128xf32>
    %cst_6 = arith.constant -1.000000e-01 : f32
    %16 = vector.broadcast %cst_6 : f32 to vector<32x128xf32>
    %17 = arith.addf %15, %16 : vector<32x128xf32>
    %cst_7 = arith.constant 0.000000e+00 : f32
    %cst_8 = arith.constant 1.000000e+00 : f32
    %18 = vector.broadcast %cst_7 : f32 to vector<32x128xf32>
    %19 = arith.maximumf %18, %17 : vector<32x128xf32>
    %20 = vector.broadcast %cst_8 : f32 to vector<32x128xf32>
    %21 = arith.minimumf %20, %19 : vector<32x128xf32>
    %22 = arith.mulf %21, %2 : vector<32x128xf32>
    %c0_9 = arith.constant 0 : index
    %c0_10 = arith.constant 0 : index
    %23 = vector.load %arg2[%c0_9, %c0_10] : memref<8x32xf32, #tpu.memory_space<vmem>>, vector<8x32xf32>
    %cst_11 = arith.constant dense<0.000000e+00> : vector<8x128xf32>
    %24 = tpu.matmul %23, %22, %cst_11 {dimension_numbers = #tpu.dot_dimension_numbers<[1], [0], [0], [1], [0, 0, 1, 1], [], []>} : vector<8x32xf32>, vector<32x128xf32>, vector<8x128xf32> -> vector<8x128xf32>
    %c0_12 = arith.constant 0 : index
    %c0_13 = arith.constant 0 : index
    %25 = vector.load %arg5[%c0_12, %c0_13] : memref<8x128xf32, #tpu.memory_space<vmem>>, vector<8x128xf32>
    tpu.vector_store %arg5[%c0_12, %c0_13], %24 {strides = array<i32>} : memref<8x128xf32, #tpu.memory_space<vmem>>, vector<8x128xf32>,
    return
  }
  func.func @transform_0(%arg0: i32) -> i32 {
    %c0_i32 = arith.constant 0 : i32
    %c0_i32_0 = arith.constant 0 : i32
    return %c0_i32 : i32
  }
  func.func @transform_1(%arg0: i32) -> (i32, i32) {
    %c0_i32 = arith.constant 0 : i32
    %c0_i32_0 = arith.constant 0 : i32
    %c0_i32_1 = arith.constant 0 : i32
    return %c0_i32, %c0_i32_0 : i32, i32
  }
  func.func @transform_2(%arg0: i32) -> (i32, i32) {
    %c0_i32 = arith.constant 0 : i32
    %c0_i32_0 = arith.constant 0 : i32
    return %c0_i32, %arg0 : i32, i32
  }
  func.func @transform_3(%arg0: i32) -> (i32, i32) {
    %c0_i32 = arith.constant 0 : i32
    %c0_i32_0 = arith.constant 0 : i32
    return %c0_i32, %arg0 : i32, i32
  }
  func.func @transform_4(%arg0: i32) -> (i32, i32) {
    %c0_i32 = arith.constant 0 : i32
    %c0_i32_0 = arith.constant 0 : i32
    return %c0_i32, %arg0 : i32, i32
  }
}

</mosaic_0001>

<bundles_post_ra>
// kernel: tpu_custom_call.1
= control target key start
LH: loop header
LB: loop body
LE: loop exit
PB: predicated region body
PF: predicated region fallthrough
CT: control target
= control target key end

     0   :  { %10 = vsyncpa [#allocation4], 0  ;;  %s439_s0 = inlined_call_operand.<no memory space> [shape: f32[1], index: 0, kind: input, shape index: {}]   ;;  %s440_s1 = inlined_call_operand.hbm [shape: f32[8,32], index: 1, kind: input, shape index: {}]   ;;  %s441_s2 = inlined_call_operand.hbm [shape: f32[32,128], index: 2, kind: input, shape index: {}]   ;;  %s442_s3 = inlined_call_operand.hbm [shape: f32[32,128], index: 3, kind: input, shape index: {}]   ;;  %s443_s4 = inlined_call_operand.hbm [shape: f32[8,128], index: 4, kind: output, shape index: {}]  }
   0x1   :  { %11 = vsyncpa [#allocation7], 0 }
   0x2   :  { %12 = vsyncpa [#allocation5], 0  ;;  %s346_s15 = smov [#allocation6]   ;;  %s252_s19 = scalar_lea.hbm %s441_s2, 512 }
   0x3   :  { %s30_s16 = sshll.u32 %s346_s15, 4  ;;  %p253_p0 = scmp.ne.s32.totalorder %s441_s2, %s252_s19  ;;  %s31_s16 = int_to_ptr.vmem [resolvable:$true] %s30_s16 }
   0x4   :  { %p256_p1 = scmp.lt.u32.totalorder %s252_s19, %s441_s2 }
   0x6   :  { %p258_p2 = pnand %p256_p1, %p253_p0 }
   0x8   :  { %261 = shalt.err (!%p258_p2)
}
   0x9   :  { %s262_s24 = scalar_lea.vmem %s31_s16, 512  ;;  %p267_p4 = scmp.lt.s32.totalorder %s31_s16, %s31_s16 }
   0xa   :  { %p263_p3 = scmp.ne.s32.totalorder %s31_s16, %s262_s24  ;;  %p268_p5 = scmp.lt.s32.totalorder %s262_s24, %s262_s24 }
   0xc   :  { %p269_p6 = por %p268_p5, %p267_p4 }
   0xe   :  { %p270_p7 = pnand %p269_p6, %p263_p3 }
  0x10   :  { %273 = shalt.err (!%p270_p7)
}
  0x11   :  { %s347_s25 = smov 128   ;;  %s348_s26 = smov 8  }
  0x12   :  { %36 = dma.hbm_to_vmem [thread:$0]  %s441_s2, 512, %s31_s16, [#allocation7], %s347_s25, %s347_s25, %s348_s26  }
  0x13   :  { %s349_s29 = smov [#allocation3]   ;;  %s350_s5 = smov [#allocation8]  }
  0x14   :  { %s21_s30 = sshll.u32 %s349_s29, 4  ;;  %s42_s6 = sshll.u32 %s350_s5, 4  ;;  %s22_s30 = int_to_ptr.vmem [resolvable:$true] %s21_s30  ;;  %s43_s6 = int_to_ptr.vmem [resolvable:$true] %s42_s6 }
  0x15   :  { %s274_s9 = scalar_lea.hbm %s440_s1, 128 }
  0x16   :  { %p275_p8 = scmp.ne.s32.totalorder %s440_s1, %s274_s9  ;;  %p278_p9 = scmp.lt.u32.totalorder %s274_s9, %s440_s1 }
  0x18   :  { %p280_p10 = pnand %p278_p9, %p275_p8 }
  0x1a   :  { %283 = shalt.err (!%p280_p10)
}
  0x1b   :  { %s284_s2 = scalar_lea.vmem %s22_s30, 128  ;;  %p289_p12 = scmp.lt.s32.totalorder %s22_s30, %s22_s30 }
  0x1c   :  { %p285_p11 = scmp.ne.s32.totalorder %s22_s30, %s284_s2  ;;  %p290_p13 = scmp.lt.s32.totalorder %s284_s2, %s284_s2 }
  0x1e   :  { %p291_p0 = por %p290_p13, %p289_p12 }
  0x20   :  { %p292_p1 = pnand %p291_p0, %p285_p11 }
  0x22   :  { %295 = shalt.err (!%p292_p1)
}
  0x23   :  { %24 = dma.hbm_to_vmem [thread:$0]  %s440_s1, 128, %s22_s30, [#allocation4]  }
  0x24   :  { %s296_s18 = scalar_lea.hbm %s442_s3, 512 }
  0x25   :  { %p297_p2 = scmp.ne.s32.totalorder %s442_s3, %s296_s18  ;;  %p300_p3 = scmp.lt.u32.totalorder %s296_s18, %s442_s3 }
  0x27   :  { %p302_p4 = pnand %p300_p3, %p297_p2 }
  0x29   :  { %305 = shalt.err (!%p302_p4)
}
  0x2a   :  { %s306_s23 = scalar_lea.vmem %s43_s6, 512  ;;  %p311_p6 = scmp.lt.s32.totalorder %s43_s6, %s43_s6 }
  0x2b   :  { %p307_p5 = scmp.ne.s32.totalorder %s43_s6, %s306_s23  ;;  %p312_p7 = scmp.lt.s32.totalorder %s306_s23, %s306_s23 }
  0x2d   :  { %p313_p8 = por %p312_p7, %p311_p6 }
  0x2f   :  { %p314_p9 = pnand %p313_p8, %p307_p5 }
  0x31   :  { %317 = shalt.err (!%p314_p9)
}
  0x32   :  { %48 = dma.hbm_to_vmem [thread:$0]  %s442_s3, 512, %s43_s6, [#allocation7], %s347_s25, %s347_s25, %s348_s26  }
  0x33   :  { %340 = dma.done.wait [#allocation4], 128  }
  0x34   :  { %341 = vsyncadd [#allocation4], 4294967168 }
  0x35   :  { %342 = dma.done.wait [#allocation7], 1024  }
  0x36   :  { %343 = vsyncadd [#allocation7], 4294966272  ;;  %v351_v0 = vmov 0.0|0.0   ;;  %vm352_vm0 = vmmov 0   ;;  %v353_v1 = vmov 0.0   ;;  %v67_v2 = vstv %s439_s0  ;;  %v59_v3 = vld [vmem:[#allocation6] sm:$0xff] }
  0x37   :  { %229 = vmatprep.subr.bf16.mxu0 %v351_v0  ;;  %226 = vmatprep.mubr.msk.f32.mxu0 %vm352_vm0, %v353_v1  ;;  %v60_v4 = vld [vmem:[#allocation6 + $0x8] sm:$0xff]  ;;  %v68_v5 = vmul.f32 %v67_v2, %v59_v3  ;;  %v72_v7 = vsub.f32 1.0, %v59_v3  ;;  %v61_v9 = vld [vmem:[#allocation6 + $0x10] sm:$0xff]  ;;  %v62_v10 = vld [vmem:[#allocation6 + $0x18] sm:$0xff]  ;;  %vm121_vm1 = vcmask 261120   ;;  %s354_s0 = smov [#allocation9]  }
  0x38   :  { %v69_v6 = vmul.f32 %v67_v2, %v60_v4  ;;  %v73_v8 = vsub.f32 1.0, %v60_v4  ;;  %v70_v11 = vmul.f32 %v67_v2, %v61_v9  ;;  %v71_v12 = vmul.f32 %v67_v2, %v62_v10  ;;  %v63_v47 = vld [vmem:[#allocation8] sm:$0xff]  ;;  %v64_v50 = vld [vmem:[#allocation8 + $0x8] sm:$0xff]  ;;  %v65_v54 = vld [vmem:[#allocation8 + $0x10] sm:$0xff]  ;;  %s202_s3 = sshll.u32 %s354_s0, 4  ;;  %s203_s3 = int_to_ptr.vmem [resolvable:$true] %s202_s3 }
  0x39   :  { %v74_v13 = vsub.f32 1.0, %v61_v9  ;;  %v75_v14 = vsub.f32 1.0, %v62_v10  ;;  %v76_v15 = vadd.f32 %v72_v7, %v68_v5  ;;  %v66_v57 = vld [vmem:[#allocation8 + $0x18] sm:$0xff]  ;;  %s318_s25 = scalar_lea.vmem %s203_s3, 128  ;;  %p323_p11 = scmp.lt.s32.totalorder %s203_s3, %s203_s3 }
  0x3a   :  { %v77_v16 = vadd.f32 %v73_v8, %v69_v6  ;;  %v120_v2 = vld [vmem:[#allocation3] sm:$0xff]  ;;  %p319_p10 = scmp.ne.s32.totalorder %s203_s3, %s318_s25  ;;  %p324_p12 = scmp.lt.s32.totalorder %s318_s25, %s318_s25 }
  0x3b   :  { %v78_v17 = vadd.f32 %v74_v13, %v70_v11  ;;  %v79_v18 = vadd.f32 %v75_v14, %v71_v12  ;;  %244 = vrcp.f32 %v76_v15 }
  0x3c   :  { %246 = vrcp.f32 %v77_v16  ;;  %p325_p13 = por %p324_p12, %p323_p11 }
  0x3d   :  { %248 = vrcp.f32 %v78_v17 }
  0x3e   :  { %250 = vrcp.f32 %v79_v18  ;;  %p326_p0 = pnand %p325_p13, %p319_p10 }
  0x45   :  { %v245_v19 = vpop.eup %244 }
  0x46   :  { %v247_v20 = vpop.eup %246  ;;  %v84_v21 = vmul.f32 %v245_v19, %v76_v15 }
  0x47   :  { %v249_v22 = vpop.eup %248  ;;  %v85_v23 = vmul.f32 %v247_v20, %v77_v16 }
  0x48   :  { %v251_v24 = vpop.eup %250  ;;  %v88_v25 = vsub.f32 2.0, %v84_v21  ;;  %v86_v26 = vmul.f32 %v249_v22, %v78_v17 }
  0x49   :  { %v89_v27 = vsub.f32 2.0, %v85_v23  ;;  %v87_v28 = vmul.f32 %v251_v24, %v79_v18 }
  0x4a   :  { %v92_v29 = vmul.f32 %v245_v19, %v88_v25  ;;  %v90_v30 = vsub.f32 2.0, %v86_v26 }
  0x4b   :  { %v93_v31 = vmul.f32 %v247_v20, %v89_v27  ;;  %v91_v32 = vsub.f32 2.0, %v87_v28 }
  0x4c   :  { %v96_v33 = vmul.f32 %v92_v29, %v68_v5  ;;  %v94_v34 = vmul.f32 %v249_v22, %v90_v30 }
  0x4d   :  { %v97_v35 = vmul.f32 %v93_v31, %v69_v6  ;;  %v95_v36 = vmul.f32 %v251_v24, %v91_v32 }
  0x4e   :  { %v100_v37 = vmul.f32 2.1, %v96_v33  ;;  %v98_v38 = vmul.f32 %v94_v34, %v70_v11 }
  0x4f   :  { %v101_v39 = vmul.f32 2.1, %v97_v35  ;;  %v99_v40 = vmul.f32 %v95_v36, %v71_v12 }
  0x50   :  { %v104_v41 = vadd.f32 -0.1, %v100_v37  ;;  %v102_v42 = vmul.f32 2.1, %v98_v38 }
  0x51   :  { %v105_v43 = vadd.f32 -0.1, %v101_v39  ;;  %v103_v44 = vmul.f32 2.1, %v99_v40 }
  0x52   :  { %v108_v45 = vmax.f32 %v104_v41, 0.0  ;;  %v106_v46 = vadd.f32 -0.1, %v102_v42 }
  0x53   :  { %v109_v48 = vmax.f32 %v105_v43, 0.0  ;;  %v107_v49 = vadd.f32 -0.1, %v103_v44 }
  0x54   :  { %v112_v51 = vmin.f32 %v108_v45, 1.0  ;;  %v110_v52 = vmax.f32 %v106_v46, 0.0 }
  0x55   :  { %v113_v53 = vmin.f32 %v109_v48, 1.0  ;;  %v111_v55 = vmax.f32 %v107_v49, 0.0 }
  0x56   :  { %v116_v56 = vmul.f32 %v112_v51, %v63_v47  ;;  %v114_v58 = vmin.f32 %v110_v52, 1.0 }
  0x57   :  { %v117_v59 = vmul.f32 %v113_v53, %v64_v50  ;;  %v115_v60 = vmin.f32 %v111_v55, 1.0 }
  0x58   :  { %v118_v61 = vmul.f32 %v114_v58, %v65_v54 }
  0x59   :  { %v230_v62 = vpack.c.bf16 %v117_v59, %v116_v56  ;;  %v119_v63 = vmul.f32 %v115_v60, %v66_v57 }
  0x5b   :  { %231 = vmatpush3.bf16.msra.mxu0 %v230_v62  ;;  %v233_v1 = vpack.c.bf16 %v119_v63, %v118_v61 }
  0x5c   :  { %232 = vmatprep.subr.bf16.mxu0 %v351_v0 }
  0x5f   :  { %234 = vmatpush3.bf16.msra.mxu0 %v233_v1 }
  0x62   :  { %227 = vmatmul.mubr.msk.f32.vlgmr.msra.gmra.mrb[0].mxu0 %vm121_vm1, %v120_v2 }
 0x135   :  { %v191_v3 = vpop.f32.mrb[0].mxu0 }
 0x136   :  { %195 = vst [vmem:[#allocation9] sm:$0xff] %v191_v3  ;;  %v228_v4 = vpop.f32.mrb[1].mxu0 }
 0x137   :  { %329 = shalt.err (!%p326_p0)
}
 0x138   :  { %s330_s30 = scalar_lea.hbm %s443_s4, 128 }
 0x139   :  { %p331_p1 = scmp.ne.s32.totalorder %s443_s4, %s330_s30  ;;  %p334_p2 = scmp.lt.u32.totalorder %s330_s30, %s443_s4 }
 0x13b   :  { %p336_p3 = pnand %p334_p2, %p331_p1 }
 0x13d   :  { %339 = shalt.err (!%p336_p3)
}
 0x13e   :  { %205 = dma.vmem_to_hbm [thread:$0]  %s203_s3, 128, %s443_s4, [#allocation5]  }
 0x13f   :  { %344 = dma.done.wait [#allocation5], 128  }
 0x140   :  { %345 = vsyncadd [#allocation5], 4294967168 }
 0x141   :  { %209 = vsyncpa [#allocation4], 1 }
 0x142   :  { %210 = vsyncpa [#allocation7], 1 }
 0x143   :  { %211 = vsyncpa [#allocation5], 1 }

</bundles_post_ra>
